<compile_context>
chip_gen: v6e
topology: v6e:2x2x1
jax: 0.10.0
libtpu: 0.0.40
codegen_flags: <defaults>
</compile_context>

<pallas_src>
import math

import jax
import jax.numpy as jnp
from jax.experimental import pallas as pl
from jax.experimental.pallas import tpu as pltpu


# ----------------------------- schedule (glue) ------------------------------
def cosine_beta_schedule(T, s=0.008):
    steps = T + 1
    t = jnp.linspace(0.0, float(T), steps)
    alphas_cumprod = jnp.cos((t / T + s) / (1.0 + s) * jnp.pi * 0.5) ** 2
    alphas_cumprod = alphas_cumprod / alphas_cumprod[0]
    betas = 1.0 - alphas_cumprod[1:] / alphas_cumprod[:-1]
    return jnp.clip(betas, 0.0, 0.999)


# ------------------------------- Pallas kernel -------------------------------
def diffusion_trainer_kernel(x0_ref, noise_ref, side_ref, loss_ref):
    # x0_ref / noise_ref : (Rt, HWp)      bf16 VMEM  (Rt = row tile, mult of C)
    # side_ref           : (R_pad, 2C+2)  f32  VMEM  (whole array, DMA'd once)
    #                      cols: [sa, soma, bias, wcyc[0..C-1], mask[1..C-1]]
    # loss_ref           : (Rt, HWp)      f32  VMEM
    rt = x0_ref.shape[0]
    n_side = side_ref.shape[1]
    c_dim = (n_side - 2) // 2

    # Slice this tile's rows out of the VMEM-resident side table.
    row0 = pl.multiple_of(pl.program_id(0) * rt, 8)
    side = side_ref[pl.ds(row0, rt), :]                       # (Rt, 2C+2) f32

    x0 = x0_ref[...].astype(jnp.float32)
    noise = noise_ref[...].astype(jnp.float32)

    # q_sample: one fully vectorized VPU op over the whole slab.
    x_t = side[:, 0:1] * x0 + side[:, 1:2] * noise            # (Rt, HWp)

    # Synthetic conditional model: per-batch 1x1 conv over channels.
    #   pred[b*C+o] = sum_c W[o,c] * x_t[b*C+c] + bias[b*C+o]
    # Group-cyclic accumulation: the diagonal term seeds the accumulator
    # (together with the bias); each off-diagonal term is two full-slab
    # sublane rolls (XLU) merged by a precomputed (row%C >= s) mask select,
    # then one weighted add (VPU).  No MXU, no structurally-zero FMAs.
    acc = side[:, 2:3] + side[:, 3:4] * x_t
    for s in range(1, c_dim):
        up = pltpu.roll(x_t, shift=s, axis=0)                 # rows with o >= s
        dn = pltpu.roll(x_t, shift=(s - c_dim) % rt, axis=0)  # rows with o <  s
        m = side[:, 2 + c_dim + s:3 + c_dim + s]              # (Rt, 1) 0/1 mask
        operand = jnp.where(m > 0.0, up, dn)
        acc = acc + side[:, 3 + s:4 + s] * operand

    # F.mse_loss(pred, noise, reduction='none') — full map, lane-dense store.
    diff = acc - noise
    loss_ref[...] = diff * diff


# ------------------------------- tiling logic --------------------------------
def _choose_tiling(R, C, HW_pad, budget_bytes=2 << 20):
    """Return (R_pad, r_tile).

    r_tile is a multiple of lcm(8, C) (so channel groups never straddle a tile
    and the (8,128) block rule holds), fits a per-operand VMEM budget, and the
    grid has >= 2 steps whenever enough rows exist (v7x megacore / overlap).
    Rows are padded rather than falling back to an over-budget whole-R tile.
    """
    base = (8 * C) // math.gcd(8, C)                         # lcm(8, C)
    max_rows = max(base, ((budget_bytes // (HW_pad * 4)) // base) * base)
    R_pad = -(-R // base) * base                             # ceil to mult of base
    r_tile = min(max_rows, R_pad)
    if R_pad // r_tile < 2 and R_pad >= 2 * base:
        # force >= 2 grid steps so both v7x TensorCores get work
        r_tile = -(-(R_pad // 2) // base) * base
    R_pad = -(-R_pad // r_tile) * r_tile                     # tile divides rows
    return R_pad, r_tile


def diffusion_trainer_forward(x_0, noise, sa, soma, w, bias_b):
    """x_0, noise: (B, C, H, W); sa, soma: (B,); w: (C, C); bias_b: (B, C)."""
    f32 = jnp.float32
    B, C, H, W = x_0.shape
    HW = H * W
    R = B * C
    HW_pad = -(-HW // 128) * 128                             # lane-dense output
    R_pad, r_tile = _choose_tiling(R, C, HW_pad)
    assert r_tile % C == 0 and r_tile % 8 == 0 and R_pad % r_tile == 0

    # bf16 HBM carriage for the big slabs (arithmetic stays f32 in-kernel).
    x0f = x_0.reshape(R, HW).astype(jnp.bfloat16)
    nf = noise.reshape(R, HW).astype(jnp.bfloat16)
    if R_pad != R or HW_pad != HW:
        pad = ((0, R_pad - R), (0, HW_pad - HW))
        x0f = jnp.pad(x0f, pad)
        nf = jnp.pad(nf, pad)

    # Merged per-row side table: [sa, soma, bias, wcyc(C), mask(C-1)] -> (R_pad, 2C+2)
    rows = jnp.arange(R_pad)
    o = rows % C
    wcyc = w.astype(f32)[o[:, None], (o[:, None] - jnp.arange(C)[None, :]) % C]
    mask = (o[:, None] >= jnp.arange(1, C)[None, :]).astype(f32)   # (R_pad, C-1)

    def pad_rows(col):
        col = col.astype(f32).reshape(R, 1)
        return col if R_pad == R else jnp.pad(col, ((0, R_pad - R), (0, 0)))

    side = jnp.concatenate(
        [pad_rows(jnp.repeat(sa, C)),
         pad_rows(jnp.repeat(soma, C)),
         pad_rows(bias_b.reshape(R)),
         wcyc, mask], axis=1)                                  # (R_pad, 2C+2)
    n_side = side.shape[1]

    grid = (R_pad // r_tile,)

    # Generation-aware VMEM budget: double-buffered slabs + resident side table.
    slab_bytes = r_tile * HW_pad * (2 + 2 + 4)                 # bf16+bf16+f32 per step
    side_bytes = R_pad * 128 * 4                               # lane-padded side table
    vmem_limit = int(min(32 << 20, max(2 * (2 * slab_bytes + 2 * side_bytes), 16 << 20)))

    loss = pl.pallas_call(
        diffusion_trainer_kernel,
        out_shape=jax.ShapeDtypeStruct((R_pad, HW_pad), jnp.float32),
        grid_spec=pltpu.PrefetchScalarGridSpec(
            num_scalar_prefetch=0,
            grid=grid,
            in_specs=[
                pl.BlockSpec((r_tile, HW_pad), lambda i: (i, 0)),   # x0 slab (bf16)
                pl.BlockSpec((r_tile, HW_pad), lambda i: (i, 0)),   # noise slab (bf16)
                pl.BlockSpec((R_pad, n_side), lambda i: (0, 0)),    # side table, resident
            ],
            out_specs=pl.BlockSpec((r_tile, HW_pad), lambda i: (i, 0)),
        ),
        compiler_params=pltpu.CompilerParams(
            dimension_semantics=("parallel",),
            vmem_limit_bytes=vmem_limit,
        ),
    )(x0f, nf, side)

    loss = loss[:R, :HW]
    return loss.reshape(B, C, H, W)


# ------------------------------ trainer (glue) -------------------------------
def gaussian_diffusion_trainer(x_0, labels, T, num_classes, key):
    B, C, H, W = x_0.shape

    # buffers from __init__
    betas = cosine_beta_schedule(T)                            # (T,)
    alphas = 1.0 - betas
    alphas_bar = jnp.cumprod(alphas, axis=0)
    sqrt_alphas_bar = jnp.sqrt(alphas_bar)                     # (T,)
    sqrt_one_minus_alphas_bar = jnp.sqrt(1.0 - alphas_bar)     # (T,)

    k_t, k_noise, k_w, k_b, k_temb, k_lemb = jax.random.split(key, 6)

    # forward() randomness
    t = jax.random.randint(k_t, (B,), 0, T)                     # torch.randint(T, (B,))
    noise = jax.random.normal(k_noise, x_0.shape, jnp.float32)  # torch.randn_like(x_0)

    # extract(v, t, x_shape) -> per-batch scalars broadcast over (C, H, W)
    sa = sqrt_alphas_bar[t]                                     # (B,)
    soma = sqrt_one_minus_alphas_bar[t]                         # (B,)

    # deterministic synthetic model parameters
    w = jax.random.normal(k_w, (C, C), jnp.float32) * 0.1       # 1x1 conv weight
    b = jax.random.normal(k_b, (C,), jnp.float32) * 0.1         # conv bias
    temb_table = jax.random.normal(k_temb, (T, C), jnp.float32) * 0.1
    lemb_table = jax.random.normal(k_lemb, (num_classes, C), jnp.float32) * 0.1
    bias_b = b[None, :] + temb_table[t] + lemb_table[labels]    # (B, C)

    loss = diffusion_trainer_forward(x_0, noise, sa, soma, w, bias_b)

    # pure-JAX reference, regenerated with the same bf16-rounded inputs the
    # kernel carries through HBM (arithmetic is f32 in both paths).
    x0_q = x_0.astype(jnp.bfloat16).astype(jnp.float32)
    noise_q = noise.astype(jnp.bfloat16).astype(jnp.float32)
    x_t_ref = sa.reshape(B, 1, 1, 1) * x0_q + soma.reshape(B, 1, 1, 1) * noise_q
    pred_ref = jnp.einsum("oc,bchw->bohw", w, x_t_ref,
                          precision=jax.lax.Precision.HIGHEST)
    pred_ref = pred_ref + bias_b[:, :, None, None]
    loss_ref = (pred_ref - noise_q) ** 2
    return loss, loss_ref


if __name__ == "__main__":
    B, C, H, W = 2, 4, 16, 16
    T = 100
    NUM_CLASSES = 10

    key = jax.random.PRNGKey(0)
    k_x, k_lab, k_rest = jax.random.split(key, 3)
    x_0 = jax.random.normal(k_x, (B, C, H, W), jnp.float32)
    labels = jax.random.randint(k_lab, (B,), 0, NUM_CLASSES)

    loss, loss_ref = gaussian_diffusion_trainer(x_0, labels, T, NUM_CLASSES, k_rest)
    loss = jax.block_until_ready(loss)

    assert loss.shape == (B, C, H, W), loss.shape
    assert jnp.allclose(loss, loss_ref, atol=1e-4, rtol=1e-4), \
        float(jnp.max(jnp.abs(loss - loss_ref)))
    print("KERNEL_OK")
</pallas_src>

<mosaic_0001>
module attributes {stable_mosaic.version = 11 : i64} {
  func.func @diffusion_trainer_kernel(%arg0: i32, %arg1: memref<8x256xbf16, #tpu.memory_space<vmem>>, %arg2: memref<8x256xbf16, #tpu.memory_space<vmem>>, %arg3: memref<8x10xf32, #tpu.memory_space<vmem>>, %arg4: memref<8x256xf32, #tpu.memory_space<vmem>>) attributes {dimension_semantics = [#tpu.dimension_semantics<parallel>], iteration_bounds = array<i64: 1>, scalar_prefetch = 0 : i64, scratch_operands = 0 : i64, tpu.core_type = #tpu.core_type<tc>, window_params = [{transform_indices = @transform_0, window_bounds = array<i64: 8, 256>}, {transform_indices = @transform_1, window_bounds = array<i64: 8, 256>}, {pipeline_mode = #tpu.pipeline_mode<synchronous>, transform_indices = @transform_2, window_bounds = array<i64: 8, 10>}, {transform_indices = @transform_3, window_bounds = array<i64: 8, 256>}]} {
    %c8_i32 = arith.constant 8 : i32
    %0 = arith.muli %arg0, %c8_i32 : i32
    %1 = tpu.assume_multiple %0, 8 : i32
    %2 = arith.index_cast %1 : i32 to index
    %c0 = arith.constant 0 : index
    %3 = vector.load %arg3[%2, %c0] : memref<8x10xf32, #tpu.memory_space<vmem>>, vector<8x10xf32>
    %c0_0 = arith.constant 0 : index
    %c0_1 = arith.constant 0 : index
    %4 = vector.load %arg1[%c0_0, %c0_1] : memref<8x256xbf16, #tpu.memory_space<vmem>>, vector<8x256xbf16>
    %5 = arith.extf %4 : vector<8x256xbf16> to vector<8x256xf32>
    %c0_2 = arith.constant 0 : index
    %c0_3 = arith.constant 0 : index
    %6 = vector.load %arg2[%c0_2, %c0_3] : memref<8x256xbf16, #tpu.memory_space<vmem>>, vector<8x256xbf16>
    %7 = arith.extf %6 : vector<8x256xbf16> to vector<8x256xf32>
    %8 = vector.extract_strided_slice %3 {offsets = [0, 0], sizes = [8, 1], strides = [1, 1]} : vector<8x10xf32> to vector<8x1xf32>
    %9 = vector.broadcast %8 : vector<8x1xf32> to vector<8x256xf32>
    %10 = arith.mulf %9, %5 : vector<8x256xf32>
    %11 = vector.extract_strided_slice %3 {offsets = [0, 1], sizes = [8, 1], strides = [1, 1]} : vector<8x10xf32> to vector<8x1xf32>
    %12 = vector.broadcast %11 : vector<8x1xf32> to vector<8x256xf32>
    %13 = arith.mulf %12, %7 : vector<8x256xf32>
    %14 = arith.addf %10, %13 : vector<8x256xf32>
    %15 = vector.extract_strided_slice %3 {offsets = [0, 2], sizes = [8, 1], strides = [1, 1]} : vector<8x10xf32> to vector<8x1xf32>
    %16 = vector.extract_strided_slice %3 {offsets = [0, 3], sizes = [8, 1], strides = [1, 1]} : vector<8x10xf32> to vector<8x1xf32>
    %17 = vector.broadcast %16 : vector<8x1xf32> to vector<8x256xf32>
    %18 = arith.mulf %17, %14 : vector<8x256xf32>
    %19 = vector.broadcast %15 : vector<8x1xf32> to vector<8x256xf32>
    %20 = arith.addf %19, %18 : vector<8x256xf32>
    %c1_i32 = arith.constant 1 : i32
    %21 = tpu.dynamic_rotate %14 by %c1_i32 dim 0 : vector<8x256xf32>, i32 -> vector<8x256xf32>
    %c5_i32 = arith.constant 5 : i32
    %22 = tpu.dynamic_rotate %14 by %c5_i32 dim 0 : vector<8x256xf32>, i32 -> vector<8x256xf32>
    %23 = vector.extract_strided_slice %3 {offsets = [0, 7], sizes = [8, 1], strides = [1, 1]} : vector<8x10xf32> to vector<8x1xf32>
    %cst = arith.constant 0.000000e+00 : f32
    %24 = vector.broadcast %cst : f32 to vector<8x1xf32>
    %25 = arith.cmpf ogt, %23, %24 : vector<8x1xf32>
    %26 = vector.shape_cast %25 : vector<8x1xi1> to vector<8x1xi1>
    %27 = vector.broadcast %26 : vector<8x1xi1> to vector<8x256xi1>
    %28 = arith.select %27, %21, %22 : vector<8x256xi1>, vector<8x256xf32>
    %29 = vector.extract_strided_slice %3 {offsets = [0, 4], sizes = [8, 1], strides = [1, 1]} : vector<8x10xf32> to vector<8x1xf32>
    %30 = vector.broadcast %29 : vector<8x1xf32> to vector<8x256xf32>
    %31 = arith.mulf %30, %28 : vector<8x256xf32>
    %32 = arith.addf %20, %31 : vector<8x256xf32>
    %c2_i32 = arith.constant 2 : i32
    %33 = tpu.dynamic_rotate %14 by %c2_i32 dim 0 : vector<8x256xf32>, i32 -> vector<8x256xf32>
    %c6_i32 = arith.constant 6 : i32
    %34 = tpu.dynamic_rotate %14 by %c6_i32 dim 0 : vector<8x256xf32>, i32 -> vector<8x256xf32>
    %35 = vector.extract_strided_slice %3 {offsets = [0, 8], sizes = [8, 1], strides = [1, 1]} : vector<8x10xf32> to vector<8x1xf32>
    %cst_4 = arith.constant 0.000000e+00 : f32
    %36 = vector.broadcast %cst_4 : f32 to vector<8x1xf32>
    %37 = arith.cmpf ogt, %35, %36 : vector<8x1xf32>
    %38 = vector.shape_cast %37 : vector<8x1xi1> to vector<8x1xi1>
    %39 = vector.broadcast %38 : vector<8x1xi1> to vector<8x256xi1>
    %40 = arith.select %39, %33, %34 : vector<8x256xi1>, vector<8x256xf32>
    %41 = vector.extract_strided_slice %3 {offsets = [0, 5], sizes = [8, 1], strides = [1, 1]} : vector<8x10xf32> to vector<8x1xf32>
    %42 = vector.broadcast %41 : vector<8x1xf32> to vector<8x256xf32>
    %43 = arith.mulf %42, %40 : vector<8x256xf32>
    %44 = arith.addf %32, %43 : vector<8x256xf32>
    %c3_i32 = arith.constant 3 : i32
    %45 = tpu.dynamic_rotate %14 by %c3_i32 dim 0 : vector<8x256xf32>, i32 -> vector<8x256xf32>
    %c7_i32 = arith.constant 7 : i32
    %46 = tpu.dynamic_rotate %14 by %c7_i32 dim 0 : vector<8x256xf32>, i32 -> vector<8x256xf32>
    %47 = vector.extract_strided_slice %3 {offsets = [0, 9], sizes = [8, 1], strides = [1, 1]} : vector<8x10xf32> to vector<8x1xf32>
    %cst_5 = arith.constant 0.000000e+00 : f32
    %48 = vector.broadcast %cst_5 : f32 to vector<8x1xf32>
    %49 = arith.cmpf ogt, %47, %48 : vector<8x1xf32>
    %50 = vector.shape_cast %49 : vector<8x1xi1> to vector<8x1xi1>
    %51 = vector.broadcast %50 : vector<8x1xi1> to vector<8x256xi1>
    %52 = arith.select %51, %45, %46 : vector<8x256xi1>, vector<8x256xf32>
    %53 = vector.extract_strided_slice %3 {offsets = [0, 6], sizes = [8, 1], strides = [1, 1]} : vector<8x10xf32> to vector<8x1xf32>
    %54 = vector.broadcast %53 : vector<8x1xf32> to vector<8x256xf32>
    %55 = arith.mulf %54, %52 : vector<8x256xf32>
    %56 = arith.addf %44, %55 : vector<8x256xf32>
    %57 = arith.subf %56, %7 : vector<8x256xf32>
    %58 = arith.mulf %57, %57 : vector<8x256xf32>
    %c0_6 = arith.constant 0 : index
    %c0_7 = arith.constant 0 : index
    %59 = vector.load %arg4[%c0_6, %c0_7] : memref<8x256xf32, #tpu.memory_space<vmem>>, vector<8x256xf32>
    tpu.vector_store %arg4[%c0_6, %c0_7], %58 {strides = array<i32>} : memref<8x256xf32, #tpu.memory_space<vmem>>, vector<8x256xf32>,
    return
  }
  func.func @transform_0(%arg0: i32) -> (i32, i32) {
    %c0_i32 = arith.constant 0 : i32
    %c0_i32_0 = arith.constant 0 : i32
    return %arg0, %c0_i32 : i32, i32
  }
  func.func @transform_1(%arg0: i32) -> (i32, i32) {
    %c0_i32 = arith.constant 0 : i32
    %c0_i32_0 = arith.constant 0 : i32
    return %arg0, %c0_i32 : i32, i32
  }
  func.func @transform_2(%arg0: i32) -> (i32, i32) {
    %c0_i32 = arith.constant 0 : i32
    %c0_i32_0 = arith.constant 0 : i32
    %c0_i32_1 = arith.constant 0 : i32
    return %c0_i32, %c0_i32_0 : i32, i32
  }
  func.func @transform_3(%arg0: i32) -> (i32, i32) {
    %c0_i32 = arith.constant 0 : i32
    %c0_i32_0 = arith.constant 0 : i32
    return %arg0, %c0_i32 : i32, i32
  }
}

</mosaic_0001>

<bundles_post_ra>
// kernel: tpu_custom_call.1
= control target key start
LH: loop header
LB: loop body
LE: loop exit
PB: predicated region body
PF: predicated region fallthrough
CT: control target
= control target key end

     0   :  { %8 = vsyncpa [#allocation3], 0  ;;  %s321_s0 = inlined_call_operand.hbm [shape: bf16[8,256], index: 0, kind: input, shape index: {}]   ;;  %s322_s1 = inlined_call_operand.hbm [shape: bf16[8,256], index: 1, kind: input, shape index: {}]   ;;  %s323_s2 = inlined_call_operand.hbm [shape: f32[8,10], index: 2, kind: input, shape index: {}]   ;;  %s324_s3 = inlined_call_operand.hbm [shape: f32[8,256], index: 3, kind: output, shape index: {}]  }
   0x1   :  { %9 = vsyncpa [#allocation6], 0 }
   0x2   :  { %10 = vsyncpa [#allocation4], 0  ;;  %s275_s12 = smov [#allocation5]   ;;  %s276_s14 = smov [#allocation2]  }
   0x3   :  { %s27_s13 = sshll.u32 %s275_s12, 4  ;;  %s17_s15 = sshll.u32 %s276_s14, 4  ;;  %s28_s13 = int_to_ptr.vmem [resolvable:$true] %s27_s13  ;;  %s18_s15 = int_to_ptr.vmem [resolvable:$true] %s17_s15 }
   0x4   :  { %s197_s16 = scalar_lea.vmem %s28_s13, 128  ;;  %p202_p1 = scmp.lt.s32.totalorder %s28_s13, %s28_s13 }
   0x5   :  { %p198_p0 = scmp.ne.s32.totalorder %s28_s13, %s197_s16  ;;  %p203_p2 = scmp.lt.s32.totalorder %s197_s16, %s197_s16 }
   0x7   :  { %p204_p3 = por %p203_p2, %p202_p1 }
   0x9   :  { %p205_p4 = pnand %p204_p3, %p198_p0 }
   0xb   :  { %208 = shalt.err (!%p205_p4)
}
   0xc   :  { %30 = dma.hbm_to_vmem [thread:$0]  %s322_s1, 128, %s28_s13, [#allocation6]  }
   0xd   :  { %s217_s19 = scalar_lea.vmem %s18_s15, 128  ;;  %p222_p6 = scmp.lt.s32.totalorder %s18_s15, %s18_s15 }
   0xe   :  { %p218_p5 = scmp.ne.s32.totalorder %s18_s15, %s217_s19  ;;  %p223_p7 = scmp.lt.s32.totalorder %s217_s19, %s217_s19 }
  0x10   :  { %p224_p8 = por %p223_p7, %p222_p6 }
  0x12   :  { %p225_p9 = pnand %p224_p8, %p218_p5 }
  0x14   :  { %228 = shalt.err (!%p225_p9)
}
  0x15   :  { %20 = dma.hbm_to_vmem [thread:$0]  %s321_s0, 128, %s18_s15, [#allocation3]  }
  0x16   :  { %s277_s22 = smov [#allocation7]  }
  0x17   :  { %s37_s23 = sshll.u32 %s277_s22, 4  ;;  %s38_s23 = int_to_ptr.vmem [resolvable:$true] %s37_s23 }
  0x18   :  { %s237_s24 = scalar_lea.vmem %s38_s23, 128  ;;  %p242_p11 = scmp.lt.s32.totalorder %s38_s23, %s38_s23 }
  0x19   :  { %p238_p10 = scmp.ne.s32.totalorder %s38_s23, %s237_s24  ;;  %p243_p12 = scmp.lt.s32.totalorder %s237_s24, %s237_s24 }
  0x1b   :  { %p244_p13 = por %p243_p12, %p242_p11 }
  0x1d   :  { %p245_p0 = pnand %p244_p13, %p238_p10 }
  0x1f   :  { %248 = shalt.err (!%p245_p0)
}
  0x20   :  { %40 = dma.hbm_to_vmem [thread:$0]  %s323_s2, 128, %s38_s23, [#allocation6]  }
  0x21   :  { %269 = dma.done.wait [#allocation3], 128  }
  0x22   :  { %270 = vsyncadd [#allocation3], 4294967168 }
  0x23   :  { %271 = dma.done.wait [#allocation6], 256  }
  0x24   :  { %272 = vsyncadd [#allocation6], 4294967040  ;;  %v278_v0 = vmov 3   ;;  %v279_v1 = vmov 0   ;;  %v52_v2 = vld [vmem:[#allocation7] sm:$0xff]  ;;  %v280_v3 = vmov 2  }
  0x25   :  { %180 = vset.pattern.permute.xlu1 %v278_v0  ;;  %178 = vset.pattern.permute.xlu0 %v279_v1  ;;  %vm90_vm0 = vcmp.gt.f32.partialorder %v52_v2, 0.0  ;;  %v281_v4 = vmov 1   ;;  %v282_v6 = vmov 7   ;;  %v283_v7 = vmov 4   ;;  %v53_v12 = vld [vmem:[#allocation2] sm:$0xff]  ;;  %v56_v13 = vld [vmem:[#allocation5] sm:$0xff] }
  0x26   :  { %75 = vperm.xlu1 %180, %v52_v2   ;;  %61 = vperm.xlu0 %178, %v52_v2   ;;  %v91_v5 = vsel %vm90_vm0, 1, %v279_v1  ;;  %v284_v8 = vmov 9   ;;  %v285_v9 = vmov 8   ;;  %v286_v10 = vmov 5   ;;  %s288_s0 = smov [#allocation8]  }
  0x27   :  { %v287_v11 = vmov 6   ;;  %v54_v16 = vunpack.c.l.bf16 %v53_v12  ;;  %v55_v17 = vunpack.c.h.bf16 %v53_v12  ;;  %v57_v18 = vunpack.c.l.bf16 %v56_v13  ;;  %s154_s2 = sshll.u32 %s288_s0, 4  ;;  %s155_s2 = int_to_ptr.vmem [resolvable:$true] %s154_s2 }
  0x28   :  { %v58_v19 = vunpack.c.h.bf16 %v56_v13  ;;  %s249_s26 = scalar_lea.vmem %s155_s2, 256  ;;  %p254_p2 = scmp.lt.s32.totalorder %s155_s2, %s155_s2 }
  0x29   :  { %p250_p1 = scmp.ne.s32.totalorder %s155_s2, %s249_s26  ;;  %p255_p3 = scmp.lt.s32.totalorder %s249_s26, %s249_s26 }
  0x2a   :  { %181 = vset.pattern.permute.xlu1 %v280_v3  ;;  %179 = vset.pattern.permute.xlu0 %v281_v4 }
  0x2b   :  { %81 = vperm.xlu1 %181, %v52_v2   ;;  %67 = vperm.xlu0 %179, %v52_v2   ;;  %p256_p4 = por %p255_p3, %p254_p2 }
  0x2d   :  { %p257_p5 = pnand %p256_p4, %p250_p1 }
  0x2f   :  { %183 = vset.pattern.permute.xlu1 %v282_v6  ;;  %182 = vset.pattern.permute.xlu0 %v283_v7 }
  0x30   :  { %99 = vperm.xlu0 %182, %v52_v2   ;;  %93 = vperm.xlu1 %183, %v91_v5  }
  0x34   :  { %186 = vset.pattern.permute.xlu0 %v284_v8  ;;  %184 = vset.pattern.permute.xlu1 %v285_v9 }
  0x35   :  { %129 = vperm.xlu0 %186, %v91_v5   ;;  %111 = vperm.xlu1 %184, %v91_v5  }
  0x39   :  { %185 = vset.pattern.permute.xlu1 %v286_v10  ;;  %188 = vset.pattern.permute.xlu0 %v287_v11 }
  0x3a   :  { %117 = vperm.xlu1 %185, %v52_v2  }
  0x3e   :  { %187 = vset.pattern.permute.xlu1 %v287_v11 }
  0x3f   :  { %135 = vperm.xlu1 %187, %v52_v2  }
  0xa1   :  { %v76_v14 = vpop.permute.xlu1 %75  ;;  %v62_v15 = vpop.permute.xlu0 %61 }
  0xa2   :  { %v64_v20 = vmul.f32 %v62_v15, %v54_v16  ;;  %v65_v21 = vmul.f32 %v62_v15, %v55_v17 }
  0xa6   :  { %v82_v22 = vpop.permute.xlu1 %81  ;;  %v68_v23 = vpop.permute.xlu0 %67 }
  0xa7   :  { %v70_v24 = vmul.f32 %v68_v23, %v57_v18  ;;  %v71_v25 = vmul.f32 %v68_v23, %v58_v19 }
  0xa9   :  { %v72_v26 = vadd.f32 %v70_v24, %v64_v20  ;;  %v73_v27 = vadd.f32 %v71_v25, %v65_v21 }
  0xab   :  { %v94_v28 = vpop.permute.xlu1 %93  ;;  %v86_v29 = vrot.slane %v72_v26, 7  ;;  %v87_v30 = vrot.slane %v73_v27, 7  ;;  %v88_v31 = vrot.slane %v72_v26, 3  ;;  %v89_v32 = vrot.slane %v73_v27, 3  ;;  %v100_v33 = vpop.permute.xlu0 %99 }
  0xac   :  { %vm95_vm1 = vcmp.eq.s32.totalorder %v94_v28, 1  ;;  %v78_v35 = vmul.f32 %v76_v14, %v72_v26  ;;  %v79_v36 = vmul.f32 %v76_v14, %v73_v27  ;;  %v106_v40 = vrot.slane %v72_v26, 6 }
  0xad   :  { %v96_v37 = vsel %vm95_vm1, %v86_v29, %v88_v31  ;;  %v97_v38 = vsel %vm95_vm1, %v87_v30, %v89_v32  ;;  %v107_v41 = vrot.slane %v73_v27, 6  ;;  %v108_v42 = vrot.slane %v72_v26, 2 }
  0xae   :  { %v109_v43 = vrot.slane %v73_v27, 2  ;;  %v84_v44 = vadd.f32 %v82_v22, %v78_v35  ;;  %v85_v45 = vadd.f32 %v82_v22, %v79_v36  ;;  %v102_v46 = vmul.f32 %v100_v33, %v96_v37 }
  0xaf   :  { %v103_v47 = vmul.f32 %v100_v33, %v97_v38  ;;  %v124_v53 = vrot.slane %v72_v26, 5  ;;  %v125_v54 = vrot.slane %v73_v27, 5  ;;  %v126_v55 = vrot.slane %v72_v26, 1 }
  0xb0   :  { %v112_v34 = vpop.permute.xlu1 %111  ;;  %v130_v39 = vpop.permute.xlu0 %129  ;;  %v127_v56 = vrot.slane %v73_v27, 1  ;;  %v104_v57 = vadd.f32 %v102_v46, %v84_v44 }
  0xb1   :  { %vm113_vm2 = vcmp.eq.s32.totalorder %v112_v34, 1  ;;  %vm131_vm3 = vcmp.eq.s32.totalorder %v130_v39, 1  ;;  %v105_v58 = vadd.f32 %v103_v47, %v85_v45 }
  0xb2   :  { %v114_v49 = vsel %vm113_vm2, %v106_v40, %v108_v42  ;;  %v115_v50 = vsel %vm113_vm2, %v107_v41, %v109_v43  ;;  %v132_v59 = vsel %vm131_vm3, %v124_v53, %v126_v55  ;;  %v133_v60 = vsel %vm131_vm3, %v125_v54, %v127_v56 }
  0xb5   :  { %v118_v48 = vpop.permute.xlu1 %117 }
  0xb6   :  { %v120_v51 = vmul.f32 %v118_v48, %v114_v49  ;;  %v121_v52 = vmul.f32 %v118_v48, %v115_v50 }
  0xb8   :  { %v122_v62 = vadd.f32 %v120_v51, %v104_v57  ;;  %v123_v63 = vadd.f32 %v121_v52, %v105_v58 }
  0xba   :  { %v136_v61 = vpop.permute.xlu1 %135 }
  0xbb   :  { %v138_v0 = vmul.f32 %v136_v61, %v132_v59  ;;  %v139_v1 = vmul.f32 %v136_v61, %v133_v60 }
  0xbd   :  { %v140_v2 = vadd.f32 %v138_v0, %v122_v62  ;;  %v141_v3 = vadd.f32 %v139_v1, %v123_v63 }
  0xbf   :  { %v142_v4 = vsub.f32 %v140_v2, %v57_v18  ;;  %v143_v5 = vsub.f32 %v141_v3, %v58_v19 }
  0xc1   :  { %v144_v6 = vmul.f32 %v142_v4, %v142_v4  ;;  %v145_v7 = vmul.f32 %v143_v5, %v143_v5 }
  0xc3   :  { %146 = vst [vmem:[#allocation8] sm:$0xff] %v144_v6  ;;  %147 = vst [vmem:[#allocation8 + $0x8] sm:$0xff] %v145_v7 }
  0xc4   :  { %260 = shalt.err (!%p257_p5)
}
  0xc5   :  { %157 = dma.vmem_to_hbm [thread:$0]  %s155_s2, 256, %s324_s3, [#allocation4]  }
  0xc6   :  { %273 = dma.done.wait [#allocation4], 256  }
  0xc7   :  { %274 = vsyncadd [#allocation4], 4294967040 }
  0xc8   :  { %161 = vsyncpa [#allocation3], 1 }
  0xc9   :  { %162 = vsyncpa [#allocation6], 1 }
  0xca   :  { %163 = vsyncpa [#allocation4], 1 }

</bundles_post_ra>
